<compile_context>
chip_gen: v7x
topology: tpu7x:2x2x1
jax: 0.10.0
libtpu: 0.0.40
codegen_flags: <defaults>
</compile_context>

<pallas_src>
import jax
import jax.numpy as jnp
from jax.experimental import pallas as pl
from jax.experimental.pallas import tpu as pltpu

IN_F = 1024
OUT_F = 512
BN_EPS = 1e-5
_SUBLANE_PACK = 16   # bf16 sublane packing
_MAX_TB = 256        # batch tile once the batch exceeds this


def _fc_bn_kernel(x_ref, w_ref, shift_ref, o_ref):
    # o = x @ w_eff + shift   (fc1 + folded bn1; drop1 is identity in eval)
    acc = jnp.dot(x_ref[...], w_ref[...], preferred_element_type=jnp.float32)
    o_ref[...] = (acc + shift_ref[...]).astype(o_ref.dtype)


def fc1_bn1_drop1(x, w_eff_bf16, shift_f32, *, tn=OUT_F):
    """Fused fc1 -> bn1(eval) -> drop1(eval, identity) on TPU via Pallas.

    x:          [B, 1024] float32
    w_eff_bf16: [1024, 512] bfloat16 (fc1.weight^T with BN scale pre-folded)
    shift_f32:  [1, 512]  float32   (bias/BN shift pre-folded)
    returns     [B, 512]  float32
    """
    B, K = x.shape
    N = w_eff_bf16.shape[1]
    assert K == IN_F and N == OUT_F and N % tn == 0

    # Choose the batch tile first, then pad the batch up to a multiple of it.
    # Small batches: one block, rounded to the bf16 sublane pack (16) so all
    # loads/stores stay unmasked. Large batches: 256-row tiles bound VMEM and
    # keep the MXU rows full.
    if B > _MAX_TB:
        tb = _MAX_TB
    else:
        tb = ((B + _SUBLANE_PACK - 1) // _SUBLANE_PACK) * _SUBLANE_PACK
    B_pad = ((B + tb - 1) // tb) * tb
    if B_pad != B:
        x = jnp.pad(x, ((0, B_pad - B), (0, 0)))
    x_bf = x.astype(jnp.bfloat16)

    grid = (B_pad // tb, N // tn)

    cost = pl.CostEstimate(
        flops=2 * B_pad * K * N,
        transcendentals=0,
        bytes_accessed=B_pad * K * 2 + K * N * 2 + N * 4 + B_pad * N * 4,
    )

    out = pl.pallas_call(
        _fc_bn_kernel,
        out_shape=jax.ShapeDtypeStruct((B_pad, N), jnp.float32),
        grid_spec=pltpu.PrefetchScalarGridSpec(
            num_scalar_prefetch=0,
            grid=grid,
            in_specs=[
                pl.BlockSpec((tb, K), lambda i, j: (i, 0)),   # x row tile
                pl.BlockSpec((K, tn), lambda i, j: (0, j)),   # folded-weight col tile
                pl.BlockSpec((1, tn), lambda i, j: (0, j)),   # folded shift tile
            ],
            out_specs=pl.BlockSpec((tb, tn), lambda i, j: (i, j)),
        ),
        compiler_params=pltpu.CompilerParams(
            dimension_semantics=("parallel", "parallel")),
        cost_estimate=cost,
    )(x_bf, w_eff_bf16, shift_f32)

    # TODO(synk): drop1 (Dropout p=0.4) is identity in eval mode; training-mode
    # stochastic masking is not part of the reference forward and is omitted.
    return out[:B] if B_pad != B else out


# jit so the pad / cast / unpad ops fuse around the pallas_call.
_fc1_bn1_drop1_jit = jax.jit(fc1_bn1_drop1, static_argnames=("tn",))


class PointNetFeatureConcat:
    """JAX/Pallas port. Parameters are initialized deterministically in-script."""

    def __init__(self, key):
        k_w, k_b, k_g, k_be, k_m, k_v = jax.random.split(key, 6)
        bound = 1.0 / (IN_F ** 0.5)
        # fc1: nn.Linear(1024, 512) — store weight already transposed [K, N].
        self.fc1_w_t = jax.random.uniform(
            k_w, (IN_F, OUT_F), jnp.float32, -bound, bound)
        self.fc1_b = jax.random.uniform(
            k_b, (OUT_F,), jnp.float32, -bound, bound)
        # bn1: nn.BatchNorm1d(512) — nontrivial deterministic running stats.
        self.bn1_gamma = 1.0 + 0.1 * jax.random.normal(k_g, (OUT_F,), jnp.float32)
        self.bn1_beta = 0.1 * jax.random.normal(k_be, (OUT_F,), jnp.float32)
        self.bn1_mean = 0.1 * jax.random.normal(k_m, (OUT_F,), jnp.float32)
        self.bn1_var = jnp.abs(1.0 + 0.1 * jax.random.normal(k_v, (OUT_F,), jnp.float32))

        # Hoisted fold (done ONCE, not per call):
        #   out = (x@W + b)*scale + (beta - mean*scale)
        #       = x @ (W*scale) + (b - mean)*scale + beta
        scale = self.bn1_gamma * jax.lax.rsqrt(self.bn1_var + BN_EPS)
        self.w_eff = (self.fc1_w_t * scale[None, :]).astype(jnp.bfloat16)
        self.shift_eff = ((self.fc1_b - self.bn1_mean) * scale
                          + self.bn1_beta).reshape(1, OUT_F).astype(jnp.float32)

    def forward(self, xyz1, xyz2, points1, points2):
        """Exact semantics of the reference forward: returns an empty list."""
        new_points = []
        return new_points

    def apply_layers(self, x):
        """Runs the layers the module defines (fc1 -> bn1 -> drop1) via Pallas."""
        return _fc1_bn1_drop1_jit(x, self.w_eff, self.shift_eff)


if __name__ == "__main__":
    key = jax.random.PRNGKey(0)
    k_mod, k1, k2, k3, k4, k5 = jax.random.split(key, 6)

    module = PointNetFeatureConcat(k_mod)

    # Small inputs matching the docstring shapes: [B, C, N], [B, C, S], [B, D, N], [B, D, S]
    B, C, D, N, S = 2, 3, 4, 16, 8
    xyz1 = jax.random.normal(k1, (B, C, N), jnp.float32)
    xyz2 = jax.random.normal(k2, (B, C, S), jnp.float32)
    points1 = jax.random.normal(k3, (B, D, N), jnp.float32)
    points2 = jax.random.normal(k4, (B, D, S), jnp.float32)

    # Reference-faithful forward: returns an empty list.
    new_points = module.forward(xyz1, xyz2, points1, points2)
    assert new_points == []

    # Exercise the Pallas hot path (fc1 + bn1 fused kernel) once.
    xb = 8  # deliberately not a multiple of 16 -> exercises host-side padding
    x = jax.random.normal(k5, (xb, IN_F), jnp.float32)
    out = module.apply_layers(x)
    out = jax.block_until_ready(out)

    # Cross-check against a plain-JAX f32 reference built from the UNfolded
    # parameters (bf16 weight stream -> ~1e-2 relative tolerance expected).
    inv_std = jax.lax.rsqrt(module.bn1_var + BN_EPS)
    ref = (x @ module.fc1_w_t + module.fc1_b - module.bn1_mean) * (
        module.bn1_gamma * inv_std) + module.bn1_beta
    assert out.shape == (xb, OUT_F)
    assert out.dtype == jnp.float32
    assert jnp.allclose(out, ref, atol=3e-2, rtol=3e-2), (
        float(jnp.max(jnp.abs(out - ref))))

    print("KERNEL_OK")
</pallas_src>

<mosaic_0001>
module attributes {stable_mosaic.version = 11 : i64} {
  func.func @_fc_bn_kernel(%arg0: i32, %arg1: i32, %arg2: memref<16x1024xbf16, #tpu.memory_space<vmem>>, %arg3: memref<1024x512xbf16, #tpu.memory_space<vmem>>, %arg4: memref<1x512xf32, #tpu.memory_space<vmem>>, %arg5: memref<16x512xf32, #tpu.memory_space<vmem>>) attributes {dimension_semantics = [#tpu.dimension_semantics<parallel>, #tpu.dimension_semantics<parallel>], iteration_bounds = array<i64: 1, 1>, scalar_prefetch = 0 : i64, scratch_operands = 0 : i64, tpu.core_type = #tpu.core_type<tc>, window_params = [{transform_indices = @transform_0, window_bounds = array<i64: 16, 1024>}, {transform_indices = @transform_1, window_bounds = array<i64: 1024, 512>}, {transform_indices = @transform_2, window_bounds = array<i64: 1, 512>}, {transform_indices = @transform_3, window_bounds = array<i64: 16, 512>}]} {
    %c0 = arith.constant 0 : index
    %c0_0 = arith.constant 0 : index
    %0 = vector.load %arg2[%c0, %c0_0] : memref<16x1024xbf16, #tpu.memory_space<vmem>>, vector<16x1024xbf16>
    %c0_1 = arith.constant 0 : index
    %c0_2 = arith.constant 0 : index
    %1 = vector.load %arg3[%c0_1, %c0_2] : memref<1024x512xbf16, #tpu.memory_space<vmem>>, vector<1024x512xbf16>
    %cst = arith.constant dense<0.000000e+00> : vector<16x512xf32>
    %2 = tpu.matmul %0, %1, %cst {dimension_numbers = #tpu.dot_dimension_numbers<[1], [0], [0], [1], [0, 0, 1, 1], [], []>} : vector<16x1024xbf16>, vector<1024x512xbf16>, vector<16x512xf32> -> vector<16x512xf32>
    %c0_3 = arith.constant 0 : index
    %c0_4 = arith.constant 0 : index
    %3 = vector.load %arg4[%c0_3, %c0_4] : memref<1x512xf32, #tpu.memory_space<vmem>>, vector<1x512xf32>
    %4 = vector.broadcast %3 : vector<1x512xf32> to vector<16x512xf32>
    %5 = arith.addf %2, %4 : vector<16x512xf32>
    %c0_5 = arith.constant 0 : index
    %c0_6 = arith.constant 0 : index
    %6 = vector.load %arg5[%c0_5, %c0_6] : memref<16x512xf32, #tpu.memory_space<vmem>>, vector<16x512xf32>
    tpu.vector_store %arg5[%c0_5, %c0_6], %5 {strides = array<i32>} : memref<16x512xf32, #tpu.memory_space<vmem>>, vector<16x512xf32>,
    return
  }
  func.func @transform_0(%arg0: i32, %arg1: i32) -> (i32, i32) {
    %c0_i32 = arith.constant 0 : i32
    %c0_i32_0 = arith.constant 0 : i32
    return %arg0, %c0_i32 : i32, i32
  }
  func.func @transform_1(%arg0: i32, %arg1: i32) -> (i32, i32) {
    %c0_i32 = arith.constant 0 : i32
    %c0_i32_0 = arith.constant 0 : i32
    return %c0_i32, %arg1 : i32, i32
  }
  func.func @transform_2(%arg0: i32, %arg1: i32) -> (i32, i32) {
    %c0_i32 = arith.constant 0 : i32
    %c0_i32_0 = arith.constant 0 : i32
    return %c0_i32, %arg1 : i32, i32
  }
  func.func @transform_3(%arg0: i32, %arg1: i32) -> (i32, i32) {
    %c0_i32 = arith.constant 0 : i32
    return %arg0, %arg1 : i32, i32
  }
}

</mosaic_0001>

<bundles_post_ra>
// kernel: fc1_bn1_drop1.1
= control target key start
LH: loop header
LB: loop body
LE: loop exit
PB: predicated region body
PF: predicated region fallthrough
CT: control target
= control target key end

     0   :  { %8 = vsyncpa [#allocation3], 0  ;;  %s2698_s12 = smov [#allocation2]   ;;  %s2808_s0 = inlined_call_operand.vmem [shape: bf16[16,1024], index: 0, kind: input, shape index: {}]   ;;  %s2809_s1 = inlined_call_operand.hbm [shape: bf16[1024,512], index: 1, kind: input, shape index: {}]   ;;  %s2810_s2 = inlined_call_operand.vmem [shape: f32[1,512], index: 2, kind: input, shape index: {}]   ;;  %s2811_s3 = inlined_call_operand.vmem [shape: f32[16,512], index: 3, kind: output, shape index: {}]  }
   0x1   :  { %s16_s13 = sshll.u32 %s2698_s12, 4  ;;  %s2674_s16 = scalar_lea.hbm %s2809_s1, 32768  ;;  %s17_s13 = int_to_ptr.vmem [resolvable:$true] %s16_s13 }
   0x2   :  { %p2675_p0 = scmp.ne.s32.totalorder %s2809_s1, %s2674_s16  ;;  %p2678_p1 = scmp.lt.u32.totalorder %s2674_s16, %s2809_s1 }
   0x4   :  { %p2680_p2 = pnand %p2678_p1, %p2675_p0 }
   0x6   :  { %2683 = shalt.err (!%p2680_p2)
}
   0x7   :  { %s2684_s21 = scalar_lea.vmem %s17_s13, 32768  ;;  %p2689_p4 = scmp.lt.s32.totalorder %s17_s13, %s17_s13 }
   0x8   :  { %p2685_p3 = scmp.ne.s32.totalorder %s17_s13, %s2684_s21  ;;  %p2690_p5 = scmp.lt.s32.totalorder %s2684_s21, %s2684_s21 }
   0xa   :  { %p2691_p6 = por %p2690_p5, %p2689_p4 }
   0xc   :  { %p2692_p7 = pnand %p2691_p6, %p2685_p3 }
   0xe   :  { %2695 = shalt.err (!%p2692_p7)
}
   0xf   :  { %s2699_s22 = smov 256   ;;  %s2700_s23 = smov 16  }
  0x10   :  { %22 = dma.hbm_to_vmem [thread:$0]  %s2809_s1, 32768, %s17_s13, [#allocation3], %s2699_s22, %s2699_s22, %s2700_s23  }
  0x11   :  { %2696 = dma.done.wait [#allocation3], 32768  }
  0x12   :  { %2697 = vsyncadd [#allocation3], 4294934528  ;;  %v2290_v0 = vld [vmem:[#allocation2 + $0x4] ss:$16 sps:$4 sm:$0xff]   ;;  %v2292_v1 = vld [vmem:[#allocation2 + $0xc] ss:$16 sps:$4 sm:$0xff]  }
  0x13   :  { %1634 = vmatprep.subr.bf16.mxu0 %v2290_v0  ;;  %v2294_v2 = vld [vmem:[#allocation2] ss:$16 sps:$4 sm:$0xff]   ;;  %v2295_v3 = vld [vmem:[#allocation2 + $0x8] ss:$16 sps:$4 sm:$0xff]   ;;  %1806 = vmatprep.subr.bf16.mxu1 %v2292_v1  ;;  %v2296_v4 = vld [vmem:[#allocation2 + $0x24] ss:$16 sps:$4 sm:$0xff]  }
  0x14   :  { %1635 = vmatpush1.bf16.msra.mxu0 %v2294_v2  ;;  %1807 = vmatpush1.bf16.msra.mxu1 %v2295_v3  ;;  %v2298_v5 = vld [vmem:[#allocation2 + $0x2c] ss:$16 sps:$4 sm:$0xff]   ;;  %v2300_v6 = vld [vmem:[#allocation2 + $0x20] ss:$16 sps:$4 sm:$0xff]   ;;  %v2301_v7 = vld [vmem:[#allocation2 + $0x28] ss:$16 sps:$4 sm:$0xff]  }
  0x15   :  { %1636 = vmatprep.subr.bf16.mxu0 %v2296_v4  ;;  %1808 = vmatprep.subr.bf16.mxu1 %v2298_v5  ;;  %v2302_v8 = vld [vmem:[#allocation2 + $0x44] ss:$16 sps:$4 sm:$0xff]   ;;  %v2304_v9 = vld [vmem:[#allocation2 + $0x4c] ss:$16 sps:$4 sm:$0xff]   ;;  %v2306_v10 = vld [vmem:[#allocation2 + $0x40] ss:$16 sps:$4 sm:$0xff]  }
  0x16   :  { %v2307_v11 = vld [vmem:[#allocation2 + $0x48] ss:$16 sps:$4 sm:$0xff]   ;;  %v2308_v12 = vld [vmem:[#allocation2 + $0x64] ss:$16 sps:$4 sm:$0xff]   ;;  %v2310_v13 = vld [vmem:[#allocation2 + $0x6c] ss:$16 sps:$4 sm:$0xff]  }
  0x17   :  { %v2312_v14 = vld [vmem:[#allocation2 + $0x60] ss:$16 sps:$4 sm:$0xff]   ;;  %v2313_v15 = vld [vmem:[#allocation2 + $0x68] ss:$16 sps:$4 sm:$0xff]   ;;  %v2314_v16 = vld [vmem:[#allocation2 + $0x84] ss:$16 sps:$4 sm:$0xff]  }
  0x18   :  { %1637 = vmatpush1.bf16.msra.mxu0 %v2300_v6  ;;  %1809 = vmatpush1.bf16.msra.mxu1 %v2301_v7  ;;  %v2316_v17 = vld [vmem:[#allocation2 + $0x8c] ss:$16 sps:$4 sm:$0xff]   ;;  %v2318_v18 = vld [vmem:[#allocation2 + $0x80] ss:$16 sps:$4 sm:$0xff]   ;;  %v2319_v19 = vld [vmem:[#allocation2 + $0x88] ss:$16 sps:$4 sm:$0xff]  }
  0x19   :  { %1638 = vmatprep.subr.bf16.mxu0 %v2302_v8  ;;  %1810 = vmatprep.subr.bf16.mxu1 %v2304_v9  ;;  %v2320_v20 = vld [vmem:[#allocation2 + $0xa4] ss:$16 sps:$4 sm:$0xff]   ;;  %v2322_v21 = vld [vmem:[#allocation2 + $0xac] ss:$16 sps:$4 sm:$0xff]   ;;  %v2324_v22 = vld [vmem:[#allocation2 + $0xa0] ss:$16 sps:$4 sm:$0xff]  }
  0x1a   :  { %v2325_v23 = vld [vmem:[#allocation2 + $0xa8] ss:$16 sps:$4 sm:$0xff]   ;;  %v2326_v24 = vld [vmem:[#allocation2 + $0xc4] ss:$16 sps:$4 sm:$0xff]   ;;  %v2328_v25 = vld [vmem:[#allocation2 + $0xcc] ss:$16 sps:$4 sm:$0xff]  }
  0x1b   :  { %v2330_v26 = vld [vmem:[#allocation2 + $0xc0] ss:$16 sps:$4 sm:$0xff]   ;;  %v2331_v27 = vld [vmem:[#allocation2 + $0xc8] ss:$16 sps:$4 sm:$0xff]   ;;  %v2332_v28 = vld [vmem:[#allocation2 + $0xe4] ss:$16 sps:$4 sm:$0xff]  }
  0x1c   :  { %1639 = vmatpush1.bf16.msra.mxu0 %v2306_v10  ;;  %1811 = vmatpush1.bf16.msra.mxu1 %v2307_v11  ;;  %v2334_v29 = vld [vmem:[#allocation2 + $0xec] ss:$16 sps:$4 sm:$0xff]   ;;  %v2336_v30 = vld [vmem:[#allocation2 + $0xe0] ss:$16 sps:$4 sm:$0xff]   ;;  %v2337_v31 = vld [vmem:[#allocation2 + $0xe8] ss:$16 sps:$4 sm:$0xff]  }
  0x1d   :  { %1640 = vmatprep.subr.bf16.mxu0 %v2308_v12  ;;  %1812 = vmatprep.subr.bf16.mxu1 %v2310_v13  ;;  %v2338_v32 = vld [vmem:[#allocation2 + $0x104] ss:$16 sps:$4 sm:$0xff]   ;;  %v2340_v33 = vld [vmem:[#allocation2 + $0x10c] ss:$16 sps:$4 sm:$0xff]   ;;  %v2342_v34 = vld [vmem:[#allocation2 + $0x100] ss:$16 sps:$4 sm:$0xff]  }
  0x1e   :  { %v2343_v35 = vld [vmem:[#allocation2 + $0x108] ss:$16 sps:$4 sm:$0xff]   ;;  %v2344_v36 = vld [vmem:[#allocation2 + $0x124] ss:$16 sps:$4 sm:$0xff]   ;;  %v2346_v37 = vld [vmem:[#allocation2 + $0x12c] ss:$16 sps:$4 sm:$0xff]  }
  0x1f   :  { %v2348_v38 = vld [vmem:[#allocation2 + $0x120] ss:$16 sps:$4 sm:$0xff]   ;;  %v2349_v39 = vld [vmem:[#allocation2 + $0x128] ss:$16 sps:$4 sm:$0xff]   ;;  %v2350_v40 = vld [vmem:[#allocation2 + $0x144] ss:$16 sps:$4 sm:$0xff]  }
  0x20   :  { %1641 = vmatpush1.bf16.msra.mxu0 %v2312_v14  ;;  %1813 = vmatpush1.bf16.msra.mxu1 %v2313_v15  ;;  %v2352_v41 = vld [vmem:[#allocation2 + $0x14c] ss:$16 sps:$4 sm:$0xff]   ;;  %v2354_v42 = vld [vmem:[#allocation2 + $0x140] ss:$16 sps:$4 sm:$0xff]   ;;  %v2355_v43 = vld [vmem:[#allocation2 + $0x148] ss:$16 sps:$4 sm:$0xff]  }
  0x21   :  { %1642 = vmatprep.subr.bf16.mxu0 %v2314_v16  ;;  %1814 = vmatprep.subr.bf16.mxu1 %v2316_v17  ;;  %v2356_v44 = vld [vmem:[#allocation2 + $0x164] ss:$16 sps:$4 sm:$0xff]   ;;  %v2358_v45 = vld [vmem:[#allocation2 + $0x16c] ss:$16 sps:$4 sm:$0xff]   ;;  %v2360_v48 = vld [vmem:[#allocation2 + $0x160] ss:$16 sps:$4 sm:$0xff]  }
  0x22   :  { %v28_v46 = vld [vmem:[%s2808_s0] sm:$0xff]  ;;  %v2361_v49 = vld [vmem:[#allocation2 + $0x168] ss:$16 sps:$4 sm:$0xff]   ;;  %v2364_v52 = vld [vmem:[#allocation2 + $0x18c] ss:$16 sps:$4 sm:$0xff]  }
  0x23   :  { %v32_v47 = vld [vmem:[%s2808_s0 + $0x20] sm:$0xff]  ;;  %v2367_v54 = vld [vmem:[#allocation2 + $0x188] ss:$16 sps:$4 sm:$0xff]   ;;  %v2370_v56 = vld [vmem:[#allocation2 + $0x1ac] ss:$16 sps:$4 sm:$0xff]  }
  0x24   :  { %1643 = vmatpush1.bf16.msra.mxu0 %v2318_v18  ;;  %1815 = vmatpush1.bf16.msra.mxu1 %v2319_v19  ;;  %v1992_v50 = vcombine.high %v28_v46, %v32_v47  ;;  %v2362_v51 = vld [vmem:[#allocation2 + $0x184] ss:$16 sps:$4 sm:$0xff]   ;;  %v2366_v53 = vld [vmem:[#allocation2 + $0x180] ss:$16 sps:$4 sm:$0xff]   ;;  %v2373_v58 = vld [vmem:[#allocation2 + $0x1a8] ss:$16 sps:$4 sm:$0xff]   ;;  %v1991_v5 = vcombine.low %v28_v46, %v32_v47 }
  0x25   :  { %1644 = vmatprep.subr.bf16.mxu0 %v2320_v20  ;;  %1816 = vmatprep.subr.bf16.mxu1 %v2322_v21  ;;  %v2368_v55 = vld [vmem:[#allocation2 + $0x1a4] ss:$16 sps:$4 sm:$0xff]   ;;  %v2372_v57 = vld [vmem:[#allocation2 + $0x1a0] ss:$16 sps:$4 sm:$0xff]   ;;  %v2376_v60 = vld [vmem:[#allocation2 + $0x1cc] ss:$16 sps:$4 sm:$0xff]  }
  0x26   :  { %1666 = vmatprep.mubr.bf16.mxu0 %v1992_v50  ;;  %1838 = vmatprep.mubr.bf16.mxu1 %v1992_v50  ;;  %v2374_v59 = vld [vmem:[#allocation2 + $0x1c4] ss:$16 sps:$4 sm:$0xff]   ;;  %v2378_v61 = vld [vmem:[#allocation2 + $0x1c0] ss:$16 sps:$4 sm:$0xff]   ;;  %v2379_v62 = vld [vmem:[#allocation2 + $0x1c8] ss:$16 sps:$4 sm:$0xff]  }
  0x27   :  { %v2380_v63 = vld [vmem:[#allocation2 + $0x1e4] ss:$16 sps:$4 sm:$0xff]   ;;  %v2382_v0 = vld [vmem:[#allocation2 + $0x1ec] ss:$16 sps:$4 sm:$0xff]   ;;  %v2384_v1 = vld [vmem:[#allocation2 + $0x1e0] ss:$16 sps:$4 sm:$0xff]  }
  0x28   :  { %1645 = vmatpush1.bf16.msra.mxu0 %v2324_v22  ;;  %1817 = vmatpush1.bf16.msra.mxu1 %v2325_v23  ;;  %v2385_v2 = vld [vmem:[#allocation2 + $0x1e8] ss:$16 sps:$4 sm:$0xff]   ;;  %v2388_v3 = vld [vmem:[#allocation2 + $0x204] ss:$16 sps:$4 sm:$0xff]   ;;  %v2391_v4 = vld [vmem:[#allocation2 + $0x20c] ss:$16 sps:$4 sm:$0xff]  }
  0x29   :  { %1646 = vmatprep.subr.bf16.mxu0 %v2326_v24  ;;  %1818 = vmatprep.subr.bf16.mxu1 %v2328_v25  ;;  %v2386_v6 = vld [vmem:[#allocation2 + $0x200] ss:$16 sps:$4 sm:$0xff]   ;;  %v2389_v7 = vld [vmem:[#allocation2 + $0x208] ss:$16 sps:$4 sm:$0xff]   ;;  %v2394_v8 = vld [vmem:[#allocation2 + $0x224] ss:$16 sps:$4 sm:$0xff]  }
  0x2a   :  { %v2397_v9 = vld [vmem:[#allocation2 + $0x22c] ss:$16 sps:$4 sm:$0xff]   ;;  %v2392_v10 = vld [vmem:[#allocation2 + $0x220] ss:$16 sps:$4 sm:$0xff]   ;;  %v2395_v11 = vld [vmem:[#allocation2 + $0x228] ss:$16 sps:$4 sm:$0xff]  }
  0x2b   :  { %v2400_v12 = vld [vmem:[#allocation2 + $0x244] ss:$16 sps:$4 sm:$0xff]   ;;  %v2403_v13 = vld [vmem:[#allocation2 + $0x24c] ss:$16 sps:$4 sm:$0xff]   ;;  %v2398_v14 = vld [vmem:[#allocation2 + $0x240] ss:$16 sps:$4 sm:$0xff]  }
  0x2c   :  { %1647 = vmatpush1.bf16.msra.mxu0 %v2330_v26  ;;  %1819 = vmatpush1.bf16.msra.mxu1 %v2331_v27  ;;  %v2401_v15 = vld [vmem:[#allocation2 + $0x248] ss:$16 sps:$4 sm:$0xff]   ;;  %v2406_v16 = vld [vmem:[#allocation2 + $0x264] ss:$16 sps:$4 sm:$0xff]   ;;  %v2409_v17 = vld [vmem:[#allocation2 + $0x26c] ss:$16 sps:$4 sm:$0xff]  }
  0x2d   :  { %1648 = vmatprep.subr.bf16.mxu0 %v2332_v28  ;;  %1820 = vmatprep.subr.bf16.mxu1 %v2334_v29  ;;  %v2404_v18 = vld [vmem:[#allocation2 + $0x260] ss:$16 sps:$4 sm:$0xff]   ;;  %v2407_v19 = vld [vmem:[#allocation2 + $0x268] ss:$16 sps:$4 sm:$0xff]   ;;  %v2412_v20 = vld [vmem:[#allocation2 + $0x284] ss:$16 sps:$4 sm:$0xff]  }
  0x2e   :  { %v2415_v21 = vld [vmem:[#allocation2 + $0x28c] ss:$16 sps:$4 sm:$0xff]   ;;  %v2410_v22 = vld [vmem:[#allocation2 + $0x280] ss:$16 sps:$4 sm:$0xff]   ;;  %v2413_v23 = vld [vmem:[#allocation2 + $0x288] ss:$16 sps:$4 sm:$0xff]  }
  0x2f   :  { %v2418_v24 = vld [vmem:[#allocation2 + $0x2a4] ss:$16 sps:$4 sm:$0xff]   ;;  %v2421_v25 = vld [vmem:[#allocation2 + $0x2ac] ss:$16 sps:$4 sm:$0xff]   ;;  %v2416_v26 = vld [vmem:[#allocation2 + $0x2a0] ss:$16 sps:$4 sm:$0xff]  }
  0x30   :  { %1649 = vmatpush1.bf16.msra.mxu0 %v2336_v30  ;;  %1821 = vmatpush1.bf16.msra.mxu1 %v2337_v31  ;;  %v2419_v27 = vld [vmem:[#allocation2 + $0x2a8] ss:$16 sps:$4 sm:$0xff]   ;;  %v2424_v28 = vld [vmem:[#allocation2 + $0x2c4] ss:$16 sps:$4 sm:$0xff]   ;;  %v2427_v29 = vld [vmem:[#allocation2 + $0x2cc] ss:$16 sps:$4 sm:$0xff]  }
  0x31   :  { %1650 = vmatprep.subr.bf16.mxu0 %v2338_v32  ;;  %1822 = vmatprep.subr.bf16.mxu1 %v2340_v33  ;;  %v2742_v30 = vld [vmem:[%s2808_s0 + $0x8] sm:$0xff]  ;;  %v2422_v32 = vld [vmem:[#allocation2 + $0x2c0] ss:$16 sps:$4 sm:$0xff]   ;;  %v2448_v47 = vld [vmem:[#allocation2 + $0x344] ss:$16 sps:$4 sm:$0xff]  }
  0x32   :  { %v2747_v31 = vld [vmem:[%s2808_s0 + $0x28] sm:$0xff] }
  0x33   :  { %v2425_v33 = vld [vmem:[#allocation2 + $0x2c8] ss:$16 sps:$4 sm:$0xff]  }
  0x34   :  { %1651 = vmatpush1.bf16.msra.mxu0 %v2342_v34  ;;  %1823 = vmatpush1.bf16.msra.mxu1 %v2343_v35  ;;  %v1994_v34 = vcombine.high %v2742_v30, %v2747_v31  ;;  %v2430_v35 = vld [vmem:[#allocation2 + $0x2e4] ss:$16 sps:$4 sm:$0xff]   ;;  %v2443_v46 = vld [vmem:[#allocation2 + $0x328] ss:$16 sps:$4 sm:$0xff]  }
  0x35   :  { %1652 = vmatprep.subr.bf16.mxu0 %v2344_v36  ;;  %1824 = vmatprep.subr.bf16.mxu1 %v2346_v37  ;;  %v2433_v36 = vld [vmem:[#allocation2 + $0x2ec] ss:$16 sps:$4 sm:$0xff]   ;;  %v2428_v37 = vld [vmem:[#allocation2 + $0x2e0] ss:$16 sps:$4 sm:$0xff]   ;;  %v2449_v50 = vld [vmem:[#allocation2 + $0x348] ss:$16 sps:$4 sm:$0xff]  }
  0x38   :  { %1653 = vmatpush1.bf16.msra.mxu0 %v2348_v38  ;;  %1825 = vmatpush1.bf16.msra.mxu1 %v2349_v39  ;;  %v2431_v38 = vld [vmem:[#allocation2 + $0x2e8] ss:$16 sps:$4 sm:$0xff]   ;;  %v2436_v39 = vld [vmem:[#allocation2 + $0x304] ss:$16 sps:$4 sm:$0xff]  }
  0x39   :  { %1654 = vmatprep.subr.bf16.mxu0 %v2350_v40  ;;  %1826 = vmatprep.subr.bf16.mxu1 %v2352_v41  ;;  %v2439_v40 = vld [vmem:[#allocation2 + $0x30c] ss:$16 sps:$4 sm:$0xff]   ;;  %v2434_v41 = vld [vmem:[#allocation2 + $0x300] ss:$16 sps:$4 sm:$0xff]  }
  0x3c   :  { %1655 = vmatpush1.bf16.msra.mxu0 %v2354_v42  ;;  %1827 = vmatpush1.bf16.msra.mxu1 %v2355_v43  ;;  %v2437_v42 = vld [vmem:[#allocation2 + $0x308] ss:$16 sps:$4 sm:$0xff]   ;;  %v2442_v43 = vld [vmem:[#allocation2 + $0x324] ss:$16 sps:$4 sm:$0xff]  }
  0x3d   :  { %1656 = vmatprep.subr.bf16.mxu0 %v2356_v44  ;;  %1828 = vmatprep.subr.bf16.mxu1 %v2358_v45  ;;  %v2445_v44 = vld [vmem:[#allocation2 + $0x32c] ss:$16 sps:$4 sm:$0xff]   ;;  %v2440_v45 = vld [vmem:[#allocation2 + $0x320] ss:$16 sps:$4 sm:$0xff]  }
  0x40   :  { %1657 = vmatpush1.bf16.msra.mxu0 %v2360_v48  ;;  %1829 = vmatpush1.bf16.msra.mxu1 %v2361_v49  ;;  %v2451_v48 = vld [vmem:[#allocation2 + $0x34c] ss:$16 sps:$4 sm:$0xff]   ;;  %v2446_v49 = vld [vmem:[#allocation2 + $0x340] ss:$16 sps:$4 sm:$0xff]  }
  0x41   :  { %1658 = vmatprep.subr.bf16.mxu0 %v2362_v51  ;;  %1830 = vmatprep.subr.bf16.mxu1 %v2364_v52  ;;  %v2454_v51 = vld [vmem:[#allocation2 + $0x364] ss:$16 sps:$4 sm:$0xff]   ;;  %v2457_v52 = vld [vmem:[#allocation2 + $0x36c] ss:$16 sps:$4 sm:$0xff]  }
  0x44   :  { %1659 = vmatpush1.bf16.msra.mxu0 %v2366_v53  ;;  %1831 = vmatpush1.bf16.msra.mxu1 %v2367_v54  ;;  %v2452_v53 = vld [vmem:[#allocation2 + $0x360] ss:$16 sps:$4 sm:$0xff]   ;;  %v2455_v54 = vld [vmem:[#allocation2 + $0x368] ss:$16 sps:$4 sm:$0xff]  }
  0x45   :  { %1660 = vmatprep.subr.bf16.mxu0 %v2368_v55  ;;  %1832 = vmatprep.subr.bf16.mxu1 %v2370_v56  ;;  %v2460_v55 = vld [vmem:[#allocation2 + $0x384] ss:$16 sps:$4 sm:$0xff]   ;;  %v2463_v56 = vld [vmem:[#allocation2 + $0x38c] ss:$16 sps:$4 sm:$0xff]  }
  0x48   :  { %1661 = vmatpush1.bf16.msra.mxu0 %v2372_v57  ;;  %1833 = vmatpush1.bf16.msra.mxu1 %v2373_v58  ;;  %v2458_v57 = vld [vmem:[#allocation2 + $0x380] ss:$16 sps:$4 sm:$0xff]   ;;  %v2461_v58 = vld [vmem:[#allocation2 + $0x388] ss:$16 sps:$4 sm:$0xff]  }
  0x49   :  { %1662 = vmatprep.subr.bf16.mxu0 %v2374_v59  ;;  %1834 = vmatprep.subr.bf16.mxu1 %v2376_v60  ;;  %v2466_v59 = vld [vmem:[#allocation2 + $0x3a4] ss:$16 sps:$4 sm:$0xff]   ;;  %v2469_v60 = vld [vmem:[#allocation2 + $0x3ac] ss:$16 sps:$4 sm:$0xff]  }
  0x4c   :  { %1663 = vmatpush1.bf16.msra.mxu0 %v2378_v61  ;;  %1835 = vmatpush1.bf16.msra.mxu1 %v2379_v62  ;;  %v2464_v61 = vld [vmem:[#allocation2 + $0x3a0] ss:$16 sps:$4 sm:$0xff]   ;;  %v2467_v62 = vld [vmem:[#allocation2 + $0x3a8] ss:$16 sps:$4 sm:$0xff]  }
  0x4d   :  { %1664 = vmatprep.subr.bf16.mxu0 %v2380_v63  ;;  %1836 = vmatprep.subr.bf16.mxu1 %v2382_v0  ;;  %v2472_v63 = vld [vmem:[#allocation2 + $0x3c4] ss:$16 sps:$4 sm:$0xff]   ;;  %v2475_v0 = vld [vmem:[#allocation2 + $0x3cc] ss:$16 sps:$4 sm:$0xff]  }
  0x50   :  { %1665 = vmatpush1.bf16.msra.mxu0 %v2384_v1  ;;  %1837 = vmatpush1.bf16.msra.mxu1 %v2385_v2  ;;  %v2470_v1 = vld [vmem:[#allocation2 + $0x3c0] ss:$16 sps:$4 sm:$0xff]   ;;  %v2473_v2 = vld [vmem:[#allocation2 + $0x3c8] ss:$16 sps:$4 sm:$0xff]  }
  0x51   :  { %1677 = vmatprep.subr.bf16.mxu0 %v2388_v3  ;;  %1849 = vmatprep.subr.bf16.mxu1 %v2391_v4  ;;  %v2478_v3 = vld [vmem:[#allocation2 + $0x3e4] ss:$16 sps:$4 sm:$0xff]   ;;  %v2481_v4 = vld [vmem:[#allocation2 + $0x3ec] ss:$16 sps:$4 sm:$0xff]  }
  0x53   :  { %1667 = vmatmul.mubr.bf16.vlgmr.msra.gmra.mrb[0].mxu0 %v1991_v5  ;;  %1839 = vmatmul.mubr.bf16.vlgmr.msra.gmra.mrb[0].mxu1 %v1991_v5  ;;  %v2476_v5 = vld [vmem:[#allocation2 + $0x3e0] ss:$16 sps:$4 sm:$0xff]  }
  0x54   :  { %1678 = vmatpush1.bf16.msra.mxu0 %v2386_v6  ;;  %1850 = vmatpush1.bf16.msra.mxu1 %v2389_v7  ;;  %v2479_v6 = vld [vmem:[#allocation2 + $0x3e8] ss:$16 sps:$4 sm:$0xff]   ;;  %v2484_v7 = vld [vmem:[#allocation2 + $0x404] ss:$16 sps:$4 sm:$0xff]  }
  0x55   :  { %1679 = vmatprep.subr.bf16.mxu0 %v2394_v8  ;;  %1851 = vmatprep.subr.bf16.mxu1 %v2397_v9  ;;  %v2487_v8 = vld [vmem:[#allocation2 + $0x40c] ss:$16 sps:$4 sm:$0xff]   ;;  %v1993_v9 = vcombine.low %v2742_v30, %v2747_v31  ;;  %v2509_v30 = vld [vmem:[#allocation2 + $0x488] ss:$16 sps:$4 sm:$0xff]   ;;  %v2514_v31 = vld [vmem:[#allocation2 + $0x4a4] ss:$16 sps:$4 sm:$0xff]  }
  0x56   :  { %1709 = vmatprep.mubr.bf16.mxu0 %v1994_v34  ;;  %1881 = vmatprep.mubr.bf16.mxu1 %v1994_v34  ;;  %v2515_v34 = vld [vmem:[#allocation2 + $0x4a8] ss:$16 sps:$4 sm:$0xff]  }
  0x58   :  { %1680 = vmatpush1.bf16.msra.mxu0 %v2392_v10  ;;  %1852 = vmatpush1.bf16.msra.mxu1 %v2395_v11  ;;  %v2482_v10 = vld [vmem:[#allocation2 + $0x400] ss:$16 sps:$4 sm:$0xff]   ;;  %v2485_v11 = vld [vmem:[#allocation2 + $0x408] ss:$16 sps:$4 sm:$0xff]  }
  0x59   :  { %1681 = vmatprep.subr.bf16.mxu0 %v2400_v12  ;;  %1853 = vmatprep.subr.bf16.mxu1 %v2403_v13  ;;  %v2490_v12 = vld [vmem:[#allocation2 + $0x424] ss:$16 sps:$4 sm:$0xff]   ;;  %v2493_v13 = vld [vmem:[#allocation2 + $0x42c] ss:$16 sps:$4 sm:$0xff]  }
  0x5c   :  { %1682 = vmatpush1.bf16.msra.mxu0 %v2398_v14  ;;  %1854 = vmatpush1.bf16.msra.mxu1 %v2401_v15  ;;  %v2756_v14 = vld [vmem:[%s2808_s0 + $0x10] sm:$0xff] }
  0x5d   :  { %1683 = vmatprep.subr.bf16.mxu0 %v2406_v16  ;;  %1855 = vmatprep.subr.bf16.mxu1 %v2409_v17  ;;  %v2761_v15 = vld [vmem:[%s2808_s0 + $0x30] sm:$0xff] }
  0x5e   :  { %v1996_v16 = vcombine.high %v2756_v14, %v2761_v15  ;;  %v2488_v17 = vld [vmem:[#allocation2 + $0x420] ss:$16 sps:$4 sm:$0xff]  }
  0x60   :  { %1684 = vmatpush1.bf16.msra.mxu0 %v2404_v18  ;;  %1856 = vmatpush1.bf16.msra.mxu1 %v2407_v19  ;;  %v2491_v18 = vld [vmem:[#allocation2 + $0x428] ss:$16 sps:$4 sm:$0xff]   ;;  %v2496_v19 = vld [vmem:[#allocation2 + $0x444] ss:$16 sps:$4 sm:$0xff]  }
  0x61   :  { %1685 = vmatprep.subr.bf16.mxu0 %v2412_v20  ;;  %1857 = vmatprep.subr.bf16.mxu1 %v2415_v21  ;;  %v2499_v20 = vld [vmem:[#allocation2 + $0x44c] ss:$16 sps:$4 sm:$0xff]   ;;  %v2494_v21 = vld [vmem:[#allocation2 + $0x440] ss:$16 sps:$4 sm:$0xff]  }
  0x64   :  { %1686 = vmatpush1.bf16.msra.mxu0 %v2410_v22  ;;  %1858 = vmatpush1.bf16.msra.mxu1 %v2413_v23  ;;  %v2497_v22 = vld [vmem:[#allocation2 + $0x448] ss:$16 sps:$4 sm:$0xff]   ;;  %v2502_v23 = vld [vmem:[#allocation2 + $0x464] ss:$16 sps:$4 sm:$0xff]  }
  0x65   :  { %1687 = vmatprep.subr.bf16.mxu0 %v2418_v24  ;;  %1859 = vmatprep.subr.bf16.mxu1 %v2421_v25  ;;  %v2505_v24 = vld [vmem:[#allocation2 + $0x46c] ss:$16 sps:$4 sm:$0xff]   ;;  %v2500_v25 = vld [vmem:[#allocation2 + $0x460] ss:$16 sps:$4 sm:$0xff]  }
  0x68   :  { %1688 = vmatpush1.bf16.msra.mxu0 %v2416_v26  ;;  %1860 = vmatpush1.bf16.msra.mxu1 %v2419_v27  ;;  %v2503_v26 = vld [vmem:[#allocation2 + $0x468] ss:$16 sps:$4 sm:$0xff]   ;;  %v2508_v27 = vld [vmem:[#allocation2 + $0x484] ss:$16 sps:$4 sm:$0xff]  }
  0x69   :  { %1689 = vmatprep.subr.bf16.mxu0 %v2424_v28  ;;  %1861 = vmatprep.subr.bf16.mxu1 %v2427_v29  ;;  %v2511_v28 = vld [vmem:[#allocation2 + $0x48c] ss:$16 sps:$4 sm:$0xff]   ;;  %v2506_v29 = vld [vmem:[#allocation2 + $0x480] ss:$16 sps:$4 sm:$0xff]  }
  0x6c   :  { %1690 = vmatpush1.bf16.msra.mxu0 %v2422_v32  ;;  %1862 = vmatpush1.bf16.msra.mxu1 %v2425_v33  ;;  %v2517_v32 = vld [vmem:[#allocation2 + $0x4ac] ss:$16 sps:$4 sm:$0xff]   ;;  %v2512_v33 = vld [vmem:[#allocation2 + $0x4a0] ss:$16 sps:$4 sm:$0xff]  }
  0x6d   :  { %1691 = vmatprep.subr.bf16.mxu0 %v2430_v35  ;;  %1863 = vmatprep.subr.bf16.mxu1 %v2433_v36  ;;  %v2520_v35 = vld [vmem:[#allocation2 + $0x4c4] ss:$16 sps:$4 sm:$0xff]   ;;  %v2523_v36 = vld [vmem:[#allocation2 + $0x4cc] ss:$16 sps:$4 sm:$0xff]  }
  0x70   :  { %1692 = vmatpush1.bf16.msra.mxu0 %v2428_v37  ;;  %1864 = vmatpush1.bf16.msra.mxu1 %v2431_v38  ;;  %v2518_v37 = vld [vmem:[#allocation2 + $0x4c0] ss:$16 sps:$4 sm:$0xff]   ;;  %v2521_v38 = vld [vmem:[#allocation2 + $0x4c8] ss:$16 sps:$4 sm:$0xff]  }
  0x71   :  { %1693 = vmatprep.subr.bf16.mxu0 %v2436_v39  ;;  %1865 = vmatprep.subr.bf16.mxu1 %v2439_v40  ;;  %v2526_v39 = vld [vmem:[#allocation2 + $0x4e4] ss:$16 sps:$4 sm:$0xff]   ;;  %v2529_v40 = vld [vmem:[#allocation2 + $0x4ec] ss:$16 sps:$4 sm:$0xff]  }
  0x74   :  { %1694 = vmatpush1.bf16.msra.mxu0 %v2434_v41  ;;  %1866 = vmatpush1.bf16.msra.mxu1 %v2437_v42  ;;  %v2524_v41 = vld [vmem:[#allocation2 + $0x4e0] ss:$16 sps:$4 sm:$0xff]   ;;  %v2527_v42 = vld [vmem:[#allocation2 + $0x4e8] ss:$16 sps:$4 sm:$0xff]  }
  0x75   :  { %1695 = vmatprep.subr.bf16.mxu0 %v2442_v43  ;;  %1867 = vmatprep.subr.bf16.mxu1 %v2445_v44  ;;  %v2532_v43 = vld [vmem:[#allocation2 + $0x504] ss:$16 sps:$4 sm:$0xff]   ;;  %v2535_v44 = vld [vmem:[#allocation2 + $0x50c] ss:$16 sps:$4 sm:$0xff]  }
  0x78   :  { %1696 = vmatpush1.bf16.msra.mxu0 %v2440_v45  ;;  %1868 = vmatpush1.bf16.msra.mxu1 %v2443_v46  ;;  %v2530_v45 = vld [vmem:[#allocation2 + $0x500] ss:$16 sps:$4 sm:$0xff]   ;;  %v2533_v46 = vld [vmem:[#allocation2 + $0x508] ss:$16 sps:$4 sm:$0xff]  }
  0x79   :  { %1697 = vmatprep.subr.bf16.mxu0 %v2448_v47  ;;  %1869 = vmatprep.subr.bf16.mxu1 %v2451_v48  ;;  %v2538_v47 = vld [vmem:[#allocation2 + $0x524] ss:$16 sps:$4 sm:$0xff]   ;;  %v2541_v48 = vld [vmem:[#allocation2 + $0x52c] ss:$16 sps:$4 sm:$0xff]  }
  0x7c   :  { %1698 = vmatpush1.bf16.msra.mxu0 %v2446_v49  ;;  %1870 = vmatpush1.bf16.msra.mxu1 %v2449_v50  ;;  %v2536_v49 = vld [vmem:[#allocation2 + $0x520] ss:$16 sps:$4 sm:$0xff]   ;;  %v2539_v50 = vld [vmem:[#allocation2 + $0x528] ss:$16 sps:$4 sm:$0xff]  }
  0x7d   :  { %1699 = vmatprep.subr.bf16.mxu0 %v2454_v51  ;;  %1871 = vmatprep.subr.bf16.mxu1 %v2457_v52  ;;  %v2544_v51 = vld [vmem:[#allocation2 + $0x544] ss:$16 sps:$4 sm:$0xff]   ;;  %v2547_v52 = vld [vmem:[#allocation2 + $0x54c] ss:$16 sps:$4 sm:$0xff]  }
  0x80   :  { %1700 = vmatpush1.bf16.msra.mxu0 %v2452_v53  ;;  %1872 = vmatpush1.bf16.msra.mxu1 %v2455_v54  ;;  %v2542_v53 = vld [vmem:[#allocation2 + $0x540] ss:$16 sps:$4 sm:$0xff]   ;;  %v2545_v54 = vld [vmem:[#allocation2 + $0x548] ss:$16 sps:$4 sm:$0xff]  }
  0x81   :  { %1701 = vmatprep.subr.bf16.mxu0 %v2460_v55  ;;  %1873 = vmatprep.subr.bf16.mxu1 %v2463_v56  ;;  %v2550_v55 = vld [vmem:[#allocation2 + $0x564] ss:$16 sps:$4 sm:$0xff]   ;;  %v2553_v56 = vld [vmem:[#allocation2 + $0x56c] ss:$16 sps:$4 sm:$0xff]  }
  0x84   :  { %1702 = vmatpush1.bf16.msra.mxu0 %v2458_v57  ;;  %1874 = vmatpush1.bf16.msra.mxu1 %v2461_v58  ;;  %v2548_v57 = vld [vmem:[#allocation2 + $0x560] ss:$16 sps:$4 sm:$0xff]   ;;  %v2551_v58 = vld [vmem:[#allocation2 + $0x568] ss:$16 sps:$4 sm:$0xff]  }
  0x85   :  { %1703 = vmatprep.subr.bf16.mxu0 %v2466_v59  ;;  %1875 = vmatprep.subr.bf16.mxu1 %v2469_v60  ;;  %v2556_v59 = vld [vmem:[#allocation2 + $0x584] ss:$16 sps:$4 sm:$0xff]   ;;  %v2559_v60 = vld [vmem:[#allocation2 + $0x58c] ss:$16 sps:$4 sm:$0xff]  }
  0x88   :  { %1704 = vmatpush1.bf16.msra.mxu0 %v2464_v61  ;;  %1876 = vmatpush1.bf16.msra.mxu1 %v2467_v62  ;;  %v2554_v61 = vld [vmem:[#allocation2 + $0x580] ss:$16 sps:$4 sm:$0xff]   ;;  %v2557_v62 = vld [vmem:[#allocation2 + $0x588] ss:$16 sps:$4 sm:$0xff]  }
  0x89   :  { %1705 = vmatprep.subr.bf16.mxu0 %v2472_v63  ;;  %1877 = vmatprep.subr.bf16.mxu1 %v2475_v0  ;;  %v2562_v63 = vld [vmem:[#allocation2 + $0x5a4] ss:$16 sps:$4 sm:$0xff]   ;;  %v2565_v0 = vld [vmem:[#allocation2 + $0x5ac] ss:$16 sps:$4 sm:$0xff]  }
  0x8c   :  { %1706 = vmatpush1.bf16.msra.mxu0 %v2470_v1  ;;  %1878 = vmatpush1.bf16.msra.mxu1 %v2473_v2  ;;  %v2560_v1 = vld [vmem:[#allocation2 + $0x5a0] ss:$16 sps:$4 sm:$0xff]   ;;  %v2563_v2 = vld [vmem:[#allocation2 + $0x5a8] ss:$16 sps:$4 sm:$0xff]  }
  0x8d   :  { %1707 = vmatprep.subr.bf16.mxu0 %v2478_v3  ;;  %1879 = vmatprep.subr.bf16.mxu1 %v2481_v4  ;;  %v2568_v3 = vld [vmem:[#allocation2 + $0x5c4] ss:$16 sps:$4 sm:$0xff]   ;;  %v2571_v4 = vld [vmem:[#allocation2 + $0x5cc] ss:$16 sps:$4 sm:$0xff]  }
  0x90   :  { %1708 = vmatpush1.bf16.msra.mxu0 %v2476_v5  ;;  %1880 = vmatpush1.bf16.msra.mxu1 %v2479_v6  ;;  %v2566_v5 = vld [vmem:[#allocation2 + $0x5c0] ss:$16 sps:$4 sm:$0xff]   ;;  %v2569_v6 = vld [vmem:[#allocation2 + $0x5c8] ss:$16 sps:$4 sm:$0xff]  }
  0x91   :  { %1720 = vmatprep.subr.bf16.mxu0 %v2484_v7  ;;  %1892 = vmatprep.subr.bf16.mxu1 %v2487_v8  ;;  %v2574_v7 = vld [vmem:[#allocation2 + $0x5e4] ss:$16 sps:$4 sm:$0xff]   ;;  %v2577_v8 = vld [vmem:[#allocation2 + $0x5ec] ss:$16 sps:$4 sm:$0xff]  }
  0x93   :  { %1710 = vmatmul.mubr.bf16.vlgmr.msra.gmra.mrb[0].mxu0 %v1993_v9  ;;  %1882 = vmatmul.mubr.bf16.vlgmr.msra.gmra.mrb[0].mxu1 %v1993_v9  ;;  %v2572_v9 = vld [vmem:[#allocation2 + $0x5e0] ss:$16 sps:$4 sm:$0xff]  }
  0x94   :  { %1721 = vmatpush1.bf16.msra.mxu0 %v2482_v10  ;;  %1893 = vmatpush1.bf16.msra.mxu1 %v2485_v11  ;;  %v2575_v10 = vld [vmem:[#allocation2 + $0x5e8] ss:$16 sps:$4 sm:$0xff]   ;;  %v2580_v11 = vld [vmem:[#allocation2 + $0x604] ss:$16 sps:$4 sm:$0xff]  }
  0x95   :  { %1722 = vmatprep.subr.bf16.mxu0 %v2490_v12  ;;  %1894 = vmatprep.subr.bf16.mxu1 %v2493_v13  ;;  %v2583_v12 = vld [vmem:[#allocation2 + $0x60c] ss:$16 sps:$4 sm:$0xff]   ;;  %v1995_v13 = vcombine.low %v2756_v14, %v2761_v15  ;;  %v2584_v15 = vld [vmem:[#allocation2 + $0x620] ss:$16 sps:$4 sm:$0xff]  }
  0x96   :  { %1752 = vmatprep.mubr.bf16.mxu0 %v1996_v16  ;;  %1924 = vmatprep.mubr.bf16.mxu1 %v1996_v16  ;;  %v2770_v16 = vld [vmem:[%s2808_s0 + $0x18] sm:$0xff] }
  0x98   :  { %1723 = vmatpush1.bf16.msra.mxu0 %v2488_v17  ;;  %1895 = vmatpush1.bf16.msra.mxu1 %v2491_v18  ;;  %v2775_v17 = vld [vmem:[%s2808_s0 + $0x38] sm:$0xff]  ;;  %v2578_v18 = vld [vmem:[#allocation2 + $0x600] ss:$16 sps:$4 sm:$0xff]  }
  0x99   :  { %1724 = vmatprep.subr.bf16.mxu0 %v2496_v19  ;;  %1896 = vmatprep.subr.bf16.mxu1 %v2499_v20  ;;  %v2581_v19 = vld [vmem:[#allocation2 + $0x608] ss:$16 sps:$4 sm:$0xff]   ;;  %v2586_v20 = vld [vmem:[#allocation2 + $0x624] ss:$16 sps:$4 sm:$0xff]   ;;  %v1998_v14 = vcombine.high %v2770_v16, %v2775_v17 }
  0x9c   :  { %1725 = vmatpush1.bf16.msra.mxu0 %v2494_v21  ;;  %1897 = vmatpush1.bf16.msra.mxu1 %v2497_v22  ;;  %v2589_v21 = vld [vmem:[#allocation2 + $0x62c] ss:$16 sps:$4 sm:$0xff]   ;;  %v2587_v22 = vld [vmem:[#allocation2 + $0x628] ss:$16 sps:$4 sm:$0xff]  }
  0x9d   :  { %1726 = vmatprep.subr.bf16.mxu0 %v2502_v23  ;;  %1898 = vmatprep.subr.bf16.mxu1 %v2505_v24  ;;  %v2592_v23 = vld [vmem:[#allocation2 + $0x644] ss:$16 sps:$4 sm:$0xff]   ;;  %v2595_v24 = vld [vmem:[#allocation2 + $0x64c] ss:$16 sps:$4 sm:$0xff]  }
  0xa0   :  { %1727 = vmatpush1.bf16.msra.mxu0 %v2500_v25  ;;  %1899 = vmatpush1.bf16.msra.mxu1 %v2503_v26  ;;  %v2590_v25 = vld [vmem:[#allocation2 + $0x640] ss:$16 sps:$4 sm:$0xff]   ;;  %v2593_v26 = vld [vmem:[#allocation2 + $0x648] ss:$16 sps:$4 sm:$0xff]  }
  0xa1   :  { %1728 = vmatprep.subr.bf16.mxu0 %v2508_v27  ;;  %1900 = vmatprep.subr.bf16.mxu1 %v2511_v28  ;;  %v2598_v27 = vld [vmem:[#allocation2 + $0x664] ss:$16 sps:$4 sm:$0xff]   ;;  %v2601_v28 = vld [vmem:[#allocation2 + $0x66c] ss:$16 sps:$4 sm:$0xff]  }
  0xa4   :  { %1729 = vmatpush1.bf16.msra.mxu0 %v2506_v29  ;;  %1901 = vmatpush1.bf16.msra.mxu1 %v2509_v30  ;;  %v2596_v29 = vld [vmem:[#allocation2 + $0x660] ss:$16 sps:$4 sm:$0xff]   ;;  %v2599_v30 = vld [vmem:[#allocation2 + $0x668] ss:$16 sps:$4 sm:$0xff]  }
  0xa5   :  { %1730 = vmatprep.subr.bf16.mxu0 %v2514_v31  ;;  %1902 = vmatprep.subr.bf16.mxu1 %v2517_v32  ;;  %v2604_v31 = vld [vmem:[#allocation2 + $0x684] ss:$16 sps:$4 sm:$0xff]   ;;  %v2607_v32 = vld [vmem:[#allocation2 + $0x68c] ss:$16 sps:$4 sm:$0xff]  }
  0xa8   :  { %1731 = vmatpush1.bf16.msra.mxu0 %v2512_v33  ;;  %1903 = vmatpush1.bf16.msra.mxu1 %v2515_v34  ;;  %v2602_v33 = vld [vmem:[#allocation2 + $0x680] ss:$16 sps:$4 sm:$0xff]   ;;  %v2605_v34 = vld [vmem:[#allocation2 + $0x688] ss:$16 sps:$4 sm:$0xff]  }
  0xa9   :  { %1732 = vmatprep.subr.bf16.mxu0 %v2520_v35  ;;  %1904 = vmatprep.subr.bf16.mxu1 %v2523_v36  ;;  %v2610_v35 = vld [vmem:[#allocation2 + $0x6a4] ss:$16 sps:$4 sm:$0xff]   ;;  %v2613_v36 = vld [vmem:[#allocation2 + $0x6ac] ss:$16 sps:$4 sm:$0xff]  }
  0xac   :  { %1733 = vmatpush1.bf16.msra.mxu0 %v2518_v37  ;;  %1905 = vmatpush1.bf16.msra.mxu1 %v2521_v38  ;;  %v2608_v37 = vld [vmem:[#allocation2 + $0x6a0] ss:$16 sps:$4 sm:$0xff]   ;;  %v2611_v38 = vld [vmem:[#allocation2 + $0x6a8] ss:$16 sps:$4 sm:$0xff]  }
  0xad   :  { %1734 = vmatprep.subr.bf16.mxu0 %v2526_v39  ;;  %1906 = vmatprep.subr.bf16.mxu1 %v2529_v40  ;;  %v2616_v39 = vld [vmem:[#allocation2 + $0x6c4] ss:$16 sps:$4 sm:$0xff]   ;;  %v2619_v40 = vld [vmem:[#allocation2 + $0x6cc] ss:$16 sps:$4 sm:$0xff]  }
  0xb0   :  { %1735 = vmatpush1.bf16.msra.mxu0 %v2524_v41  ;;  %1907 = vmatpush1.bf16.msra.mxu1 %v2527_v42  ;;  %v2614_v41 = vld [vmem:[#allocation2 + $0x6c0] ss:$16 sps:$4 sm:$0xff]   ;;  %v2617_v42 = vld [vmem:[#allocation2 + $0x6c8] ss:$16 sps:$4 sm:$0xff]  }
  0xb1   :  { %1736 = vmatprep.subr.bf16.mxu0 %v2532_v43  ;;  %1908 = vmatprep.subr.bf16.mxu1 %v2535_v44  ;;  %v2622_v43 = vld [vmem:[#allocation2 + $0x6e4] ss:$16 sps:$4 sm:$0xff]   ;;  %v2625_v44 = vld [vmem:[#allocation2 + $0x6ec] ss:$16 sps:$4 sm:$0xff]  }
  0xb4   :  { %1737 = vmatpush1.bf16.msra.mxu0 %v2530_v45  ;;  %1909 = vmatpush1.bf16.msra.mxu1 %v2533_v46  ;;  %v2620_v45 = vld [vmem:[#allocation2 + $0x6e0] ss:$16 sps:$4 sm:$0xff]   ;;  %v2623_v46 = vld [vmem:[#allocation2 + $0x6e8] ss:$16 sps:$4 sm:$0xff]  }
  0xb5   :  { %1738 = vmatprep.subr.bf16.mxu0 %v2538_v47  ;;  %1910 = vmatprep.subr.bf16.mxu1 %v2541_v48  ;;  %v2628_v47 = vld [vmem:[#allocation2 + $0x704] ss:$16 sps:$4 sm:$0xff]   ;;  %v2631_v48 = vld [vmem:[#allocation2 + $0x70c] ss:$16 sps:$4 sm:$0xff]  }
  0xb8   :  { %1739 = vmatpush1.bf16.msra.mxu0 %v2536_v49  ;;  %1911 = vmatpush1.bf16.msra.mxu1 %v2539_v50  ;;  %v2626_v49 = vld [vmem:[#allocation2 + $0x700] ss:$16 sps:$4 sm:$0xff]   ;;  %v2629_v50 = vld [vmem:[#allocation2 + $0x708] ss:$16 sps:$4 sm:$0xff]  }
  0xb9   :  { %1740 = vmatprep.subr.bf16.mxu0 %v2544_v51  ;;  %1912 = vmatprep.subr.bf16.mxu1 %v2547_v52  ;;  %v2634_v51 = vld [vmem:[#allocation2 + $0x724] ss:$16 sps:$4 sm:$0xff]   ;;  %v2637_v52 = vld [vmem:[#allocation2 + $0x72c] ss:$16 sps:$4 sm:$0xff]  }
  0xbc   :  { %1741 = vmatpush1.bf16.msra.mxu0 %v2542_v53  ;;  %1913 = vmatpush1.bf16.msra.mxu1 %v2545_v54  ;;  %v2632_v53 = vld [vmem:[#allocation2 + $0x720] ss:$16 sps:$4 sm:$0xff]   ;;  %v2635_v54 = vld [vmem:[#allocation2 + $0x728] ss:$16 sps:$4 sm:$0xff]  }
  0xbd   :  { %1742 = vmatprep.subr.bf16.mxu0 %v2550_v55  ;;  %1914 = vmatprep.subr.bf16.mxu1 %v2553_v56  ;;  %v2640_v55 = vld [vmem:[#allocation2 + $0x744] ss:$16 sps:$4 sm:$0xff]   ;;  %v2643_v56 = vld [vmem:[#allocation2 + $0x74c] ss:$16 sps:$4 sm:$0xff]  }
  0xc0   :  { %1743 = vmatpush1.bf16.msra.mxu0 %v2548_v57  ;;  %1915 = vmatpush1.bf16.msra.mxu1 %v2551_v58  ;;  %v2638_v57 = vld [vmem:[#allocation2 + $0x740] ss:$16 sps:$4 sm:$0xff]   ;;  %v2641_v58 = vld [vmem:[#allocation2 + $0x748] ss:$16 sps:$4 sm:$0xff]  }
  0xc1   :  { %1744 = vmatprep.subr.bf16.mxu0 %v2556_v59  ;;  %1916 = vmatprep.subr.bf16.mxu1 %v2559_v60  ;;  %v2646_v59 = vld [vmem:[#allocation2 + $0x764] ss:$16 sps:$4 sm:$0xff]   ;;  %v2649_v60 = vld [vmem:[#allocation2 + $0x76c] ss:$16 sps:$4 sm:$0xff]  }
  0xc4   :  { %1745 = vmatpush1.bf16.msra.mxu0 %v2554_v61  ;;  %1917 = vmatpush1.bf16.msra.mxu1 %v2557_v62  ;;  %v2644_v61 = vld [vmem:[#allocation2 + $0x760] ss:$16 sps:$4 sm:$0xff]   ;;  %v2647_v62 = vld [vmem:[#allocation2 + $0x768] ss:$16 sps:$4 sm:$0xff]  }
  0xc5   :  { %1746 = vmatprep.subr.bf16.mxu0 %v2562_v63  ;;  %1918 = vmatprep.subr.bf16.mxu1 %v2565_v0  ;;  %v2652_v63 = vld [vmem:[#allocation2 + $0x784] ss:$16 sps:$4 sm:$0xff]   ;;  %v2655_v0 = vld [vmem:[#allocation2 + $0x78c] ss:$16 sps:$4 sm:$0xff]  }
  0xc8   :  { %1747 = vmatpush1.bf16.msra.mxu0 %v2560_v1  ;;  %1919 = vmatpush1.bf16.msra.mxu1 %v2563_v2  ;;  %v2650_v1 = vld [vmem:[#allocation2 + $0x780] ss:$16 sps:$4 sm:$0xff]   ;;  %v2653_v2 = vld [vmem:[#allocation2 + $0x788] ss:$16 sps:$4 sm:$0xff]  }
  0xc9   :  { %1748 = vmatprep.subr.bf16.mxu0 %v2568_v3  ;;  %1920 = vmatprep.subr.bf16.mxu1 %v2571_v4  ;;  %v2658_v3 = vld [vmem:[#allocation2 + $0x7a4] ss:$16 sps:$4 sm:$0xff]   ;;  %v2661_v4 = vld [vmem:[#allocation2 + $0x7ac] ss:$16 sps:$4 sm:$0xff]  }
  0xcc   :  { %1749 = vmatpush1.bf16.msra.mxu0 %v2566_v5  ;;  %1921 = vmatpush1.bf16.msra.mxu1 %v2569_v6  ;;  %v2656_v5 = vld [vmem:[#allocation2 + $0x7a0] ss:$16 sps:$4 sm:$0xff]   ;;  %v2659_v6 = vld [vmem:[#allocation2 + $0x7a8] ss:$16 sps:$4 sm:$0xff]  }
  0xcd   :  { %1750 = vmatprep.subr.bf16.mxu0 %v2574_v7  ;;  %1922 = vmatprep.subr.bf16.mxu1 %v2577_v8  ;;  %v2664_v7 = vld [vmem:[#allocation2 + $0x7c4] ss:$16 sps:$4 sm:$0xff]   ;;  %v2667_v8 = vld [vmem:[#allocation2 + $0x7cc] ss:$16 sps:$4 sm:$0xff]  }
  0xd0   :  { %1751 = vmatpush1.bf16.msra.mxu0 %v2572_v9  ;;  %1923 = vmatpush1.bf16.msra.mxu1 %v2575_v10  ;;  %v2662_v9 = vld [vmem:[#allocation2 + $0x7c0] ss:$16 sps:$4 sm:$0xff]   ;;  %v2665_v10 = vld [vmem:[#allocation2 + $0x7c8] ss:$16 sps:$4 sm:$0xff]  }
  0xd1   :  { %1763 = vmatprep.subr.bf16.mxu0 %v2580_v11  ;;  %1935 = vmatprep.subr.bf16.mxu1 %v2583_v12  ;;  %v2670_v11 = vld [vmem:[#allocation2 + $0x7e4] ss:$16 sps:$4 sm:$0xff]   ;;  %v2673_v12 = vld [vmem:[#allocation2 + $0x7ec] ss:$16 sps:$4 sm:$0xff]  }
  0xd3   :  { %1753 = vmatmul.mubr.bf16.vlgmr.msra.gmra.mrb[0].mxu0 %v1995_v13  ;;  %1925 = vmatmul.mubr.bf16.vlgmr.msra.gmra.mrb[0].mxu1 %v1995_v13  ;;  %v2668_v13 = vld [vmem:[#allocation2 + $0x7e0] ss:$16 sps:$4 sm:$0xff]  }
  0xd4   :  { %1764 = vmatpush1.bf16.msra.mxu0 %v2578_v18  ;;  %1936 = vmatpush1.bf16.msra.mxu1 %v2581_v19  ;;  %v2671_v18 = vld [vmem:[#allocation2 + $0x7e8] ss:$16 sps:$4 sm:$0xff]   ;;  %v1997_v19 = vcombine.low %v2770_v16, %v2775_v17 }
  0xd5   :  { %1765 = vmatprep.subr.bf16.mxu0 %v2586_v20  ;;  %1937 = vmatprep.subr.bf16.mxu1 %v2589_v21  ;;  %v294_v20 = vlaneseq }
  0xd6   :  { %1795 = vmatprep.mubr.bf16.mxu0 %v1998_v14  ;;  %1967 = vmatprep.mubr.bf16.mxu1 %v1998_v14 }
  0xd7   :  { %v295_v21 = vshrl.u32 %v294_v20, 7 }
  0xd8   :  { %1766 = vmatpush1.bf16.msra.mxu0 %v2584_v15  ;;  %1938 = vmatpush1.bf16.msra.mxu1 %v2587_v22  ;;  %v292_v22 = vld [vmem:[%s2810_s2] sm:$0xf] }
  0xd9   :  { %1767 = vmatprep.subr.bf16.mxu0 %v2592_v23  ;;  %1939 = vmatprep.subr.bf16.mxu1 %v2595_v24  ;;  %v296_v14 = vsub.s32 0, %v295_v21  ;;  %v304_v15 = vsub.s32 2, %v295_v21  ;;  %v300_v23 = vsub.s32 1, %v295_v21  ;;  %v308_v24 = vsub.s32 3, %v295_v21 }
  0xdc   :  { %1768 = vmatpush1.bf16.msra.mxu0 %v2590_v25  ;;  %1940 = vmatpush1.bf16.msra.mxu1 %v2593_v26  ;;  %v297_v25 = vrot.slane %v292_v22, %v296_v14  ;;  %v305_v26 = vrot.slane %v292_v22, %v304_v15 }
  0xdd   :  { %1769 = vmatprep.subr.bf16.mxu0 %v2598_v27  ;;  %1941 = vmatprep.subr.bf16.mxu1 %v2601_v28  ;;  %v301_v27 = vrot.slane %v292_v22, %v300_v23  ;;  %v309_v28 = vrot.slane %v292_v22, %v308_v24 }
  0xe0   :  { %1770 = vmatpush1.bf16.msra.mxu0 %v2596_v29  ;;  %1942 = vmatpush1.bf16.msra.mxu1 %v2599_v30 }
  0xe1   :  { %1771 = vmatprep.subr.bf16.mxu0 %v2604_v31  ;;  %1943 = vmatprep.subr.bf16.mxu1 %v2607_v32 }
  0xe4   :  { %1772 = vmatpush1.bf16.msra.mxu0 %v2602_v33  ;;  %1944 = vmatpush1.bf16.msra.mxu1 %v2605_v34 }
  0xe5   :  { %1773 = vmatprep.subr.bf16.mxu0 %v2610_v35  ;;  %1945 = vmatprep.subr.bf16.mxu1 %v2613_v36 }
  0xe8   :  { %1774 = vmatpush1.bf16.msra.mxu0 %v2608_v37  ;;  %1946 = vmatpush1.bf16.msra.mxu1 %v2611_v38 }
  0xe9   :  { %1775 = vmatprep.subr.bf16.mxu0 %v2616_v39  ;;  %1947 = vmatprep.subr.bf16.mxu1 %v2619_v40 }
  0xec   :  { %1776 = vmatpush1.bf16.msra.mxu0 %v2614_v41  ;;  %1948 = vmatpush1.bf16.msra.mxu1 %v2617_v42 }
  0xed   :  { %1777 = vmatprep.subr.bf16.mxu0 %v2622_v43  ;;  %1949 = vmatprep.subr.bf16.mxu1 %v2625_v44 }
  0xf0   :  { %1778 = vmatpush1.bf16.msra.mxu0 %v2620_v45  ;;  %1950 = vmatpush1.bf16.msra.mxu1 %v2623_v46 }
  0xf1   :  { %1779 = vmatprep.subr.bf16.mxu0 %v2628_v47  ;;  %1951 = vmatprep.subr.bf16.mxu1 %v2631_v48 }
  0xf4   :  { %1780 = vmatpush1.bf16.msra.mxu0 %v2626_v49  ;;  %1952 = vmatpush1.bf16.msra.mxu1 %v2629_v50 }
  0xf5   :  { %1781 = vmatprep.subr.bf16.mxu0 %v2634_v51  ;;  %1953 = vmatprep.subr.bf16.mxu1 %v2637_v52 }
  0xf8   :  { %1782 = vmatpush1.bf16.msra.mxu0 %v2632_v53  ;;  %1954 = vmatpush1.bf16.msra.mxu1 %v2635_v54 }
  0xf9   :  { %1783 = vmatprep.subr.bf16.mxu0 %v2640_v55  ;;  %1955 = vmatprep.subr.bf16.mxu1 %v2643_v56 }
  0xfc   :  { %1784 = vmatpush1.bf16.msra.mxu0 %v2638_v57  ;;  %1956 = vmatpush1.bf16.msra.mxu1 %v2641_v58 }
  0xfd   :  { %1785 = vmatprep.subr.bf16.mxu0 %v2646_v59  ;;  %1957 = vmatprep.subr.bf16.mxu1 %v2649_v60 }
 0x100   :  { %1786 = vmatpush1.bf16.msra.mxu0 %v2644_v61  ;;  %1958 = vmatpush1.bf16.msra.mxu1 %v2647_v62 }
 0x101   :  { %1787 = vmatprep.subr.bf16.mxu0 %v2652_v63  ;;  %1959 = vmatprep.subr.bf16.mxu1 %v2655_v0 }
 0x104   :  { %1788 = vmatpush1.bf16.msra.mxu0 %v2650_v1  ;;  %1960 = vmatpush1.bf16.msra.mxu1 %v2653_v2 }
 0x105   :  { %1789 = vmatprep.subr.bf16.mxu0 %v2658_v3  ;;  %1961 = vmatprep.subr.bf16.mxu1 %v2661_v4 }
 0x108   :  { %1790 = vmatpush1.bf16.msra.mxu0 %v2656_v5  ;;  %1962 = vmatpush1.bf16.msra.mxu1 %v2659_v6 }
 0x109   :  { %1791 = vmatprep.subr.bf16.mxu0 %v2664_v7  ;;  %1963 = vmatprep.subr.bf16.mxu1 %v2667_v8 }
 0x10c   :  { %1792 = vmatpush1.bf16.msra.mxu0 %v2662_v9  ;;  %1964 = vmatpush1.bf16.msra.mxu1 %v2665_v10 }
 0x10d   :  { %1793 = vmatprep.subr.bf16.mxu0 %v2670_v11  ;;  %1965 = vmatprep.subr.bf16.mxu1 %v2673_v12 }
 0x110   :  { %1794 = vmatpush1.bf16.msra.mxu0 %v2668_v13  ;;  %1966 = vmatpush1.bf16.msra.mxu1 %v2671_v18 }
 0x113   :  { %1796 = vmatmul.mubr.bf16.vlgmr.msra.gmra.mrb[0].mxu0 %v1997_v19  ;;  %1968 = vmatmul.mubr.bf16.vlgmr.msra.gmra.mrb[0].mxu1 %v1997_v19 }
 0x1e6   :  { %v1797_v29 = vpop.f32.mrb[0].mxu0  ;;  %v1969_v16 = vpop.f32.mrb[0].mxu1 }
 0x1e7   :  { %v2255_v17 = vadd.f32 %v1797_v29, %v297_v25  ;;  %v2259_v30 = vadd.f32 %v1969_v16, %v305_v26  ;;  %v1799_v31 = vpop.f32.mrb[1].mxu0  ;;  %v1971_v32 = vpop.f32.mrb[1].mxu1 }
 0x1e8   :  { %v2256_v33 = vadd.f32 %v1799_v31, %v301_v27  ;;  %v2260_v34 = vadd.f32 %v1971_v32, %v309_v28  ;;  %v1801_v35 = vpop.f32.mrb[2].mxu0  ;;  %v1973_v36 = vpop.f32.mrb[2].mxu1 }
 0x1e9   :  { %1978 = vst [vmem:[%s2811_s3] sm:$0xff] %v2255_v17  ;;  %1980 = vst [vmem:[%s2811_s3 + $0x10] sm:$0xff] %v2259_v30  ;;  %v2257_v37 = vadd.f32 %v1801_v35, %v297_v25  ;;  %v2261_v38 = vadd.f32 %v1973_v36, %v305_v26  ;;  %v1803_v39 = vpop.f32.mrb[3].mxu0  ;;  %v1975_v40 = vpop.f32.mrb[3].mxu1 }
 0x1ea   :  { %1979 = vst [vmem:[%s2811_s3 + $0x8] sm:$0xff] %v2256_v33  ;;  %1981 = vst [vmem:[%s2811_s3 + $0x18] sm:$0xff] %v2260_v34  ;;  %v2258_v41 = vadd.f32 %v1803_v39, %v301_v27  ;;  %v2262_v42 = vadd.f32 %v1975_v40, %v309_v28 }
 0x1eb   :  { %1982 = vst [vmem:[%s2811_s3 + $0x20] sm:$0xff] %v2257_v37  ;;  %1984 = vst [vmem:[%s2811_s3 + $0x30] sm:$0xff] %v2261_v38 }
 0x1ec   :  { %1983 = vst [vmem:[%s2811_s3 + $0x28] sm:$0xff] %v2258_v41  ;;  %1985 = vst [vmem:[%s2811_s3 + $0x38] sm:$0xff] %v2262_v42 }
 0x1ed   :  { %1990 = vsyncpa [#allocation3], 1 }

</bundles_post_ra>
